<compile_context>
chip_gen: v7x
topology: tpu7x:2x2x1
jax: 0.10.0
libtpu: 0.0.40
codegen_flags: <defaults>
</compile_context>

<pallas_src>
import functools

import jax
import jax.numpy as jnp
from jax.experimental import pallas as pl
from jax.experimental.pallas import tpu as pltpu


def _round_up(x, m):
    return ((x + m - 1) // m) * m


def _attention_kernel(ah_ref, p_ref, f_ref, *rest, has_mask):
    """One batch block: tanh(p + att_h) -> scores -> (masked) softmax -> weighted sum."""
    if has_mask:
        m_ref, wa_ref, out_ref = rest
    else:
        m_ref = None
        wa_ref, out_ref = rest

    # tanh in the native dtype of p_att_feats (bf16 on v6e/v7x halves EUP/VPU
    # traffic; f32 inputs keep the exact f32 path).
    # TODO(synk): on v5e (no bf16 VPU/EUP) force f32 compute here when feeding bf16.
    cdt = p_ref.dtype
    att_h = ah_ref[...]                                             # (Bblk, hid) f32
    dot = jnp.tanh(p_ref[...] + att_h.astype(cdt)[:, None, :])      # (Bblk, A, hid)

    # alpha_net: contract hid against the (1, hid) weight row -> lane-dense (Bblk, A)
    # scores with f32 accumulation.  The scalar alpha_net bias is dropped: a constant
    # shift along the softmax axis cannot change the output.
    wa = wa_ref[...]                                                # (1, hid) f32
    score = jnp.sum((dot * wa.astype(cdt)).astype(jnp.float32), axis=-1)  # (Bblk, A)

    # Lane-major softmax over A; the optional mask is fused into a single
    # normalization: softmax(x)*m / sum(softmax(x)*m) == e*m / sum(e*m).
    mx = jnp.max(score, axis=-1, keepdims=True)
    e = jnp.exp(score - mx)
    if has_mask:
        e = e * m_ref[...].astype(jnp.float32)
    denom = jnp.sum(e, axis=-1, keepdims=True)
    # Exact f32 division (approx EUP reciprocal was failing 1e-3 f32 tolerances;
    # the kernel is HBM-bound so this divide is free filler).
    # NOTE: all-zero mask rows divide by zero (NaN), matching the PyTorch reference.
    weight = e * (1.0 / denom)                                      # (Bblk, A) f32

    # Weighted sum over attention positions on the MXU, f32 accumulation, feeding
    # att_feats in its native dtype (no materialized f32 copy of the big block).
    w3 = weight.astype(f_ref.dtype)[:, None, :]                     # (Bblk, 1, A)
    out = jnp.einsum("bqa,bar->bqr", w3, f_ref[...],
                     preferred_element_type=jnp.float32)[:, 0, :]   # (Bblk, rnn)
    out_ref[...] = out.astype(out_ref.dtype)


def _default_vmem_limit_bytes():
    # v7x has only 64 MiB VMEM per TensorCore; v5e/v6e have 128 MiB.
    try:
        cap = pltpu.get_tpu_info().vmem_capacity_bytes
    except Exception:
        return 40 * 1024 * 1024
    return 40 * 1024 * 1024 if cap <= 64 * 1024 * 1024 else 96 * 1024 * 1024


def attention_pallas(h, att_feats, p_att_feats, att_mask=None, *,
                     w_h2att, b_h2att, w_alpha, b_alpha,
                     block_b=None, vmem_limit_bytes=None):
    """h: (B, rnn), att_feats: (B, A, rnn), p_att_feats: (B, A, hid),
    att_mask: optional (B, A).  Weights: w_h2att (rnn, hid), b_h2att (hid,),
    w_alpha (hid, 1), b_alpha (1,) (b_alpha is accepted but provably has no
    effect on the output and is not used in the kernel)."""
    B, rnn = h.shape
    A = att_feats.shape[1]
    hid = p_att_feats.shape[2]

    if vmem_limit_bytes is None:
        vmem_limit_bytes = _default_vmem_limit_bytes()

    # Hoisted h2att projection: one (B, rnn) @ (rnn, hid) MXU matmul in the native
    # operand dtype with f32 accumulation.
    att_h = (jnp.dot(h, w_h2att.astype(h.dtype),
                     preferred_element_type=jnp.float32)
             + b_h2att.astype(jnp.float32)[None, :])                # (B, hid) f32

    # alpha_net weight as a lane-dense (1, hid) f32 row.
    wa_row = w_alpha.astype(jnp.float32).reshape(1, hid)

    use_mask = att_mask is not None
    if use_mask and not jnp.issubdtype(att_mask.dtype, jnp.floating):
        att_mask = att_mask.astype(jnp.float32)  # bool/int masks -> f32 once

    # ---------------- batch-block sizing ----------------
    p_isz = p_att_feats.dtype.itemsize
    f_isz = att_feats.dtype.itemsize
    o_isz = att_feats.dtype.itemsize
    m_isz = att_mask.dtype.itemsize if use_mask else 0

    def stream_row_bytes():
        b = A * (hid * p_isz + rnn * f_isz) + hid * 4 + rnn * o_isz
        if use_mask:
            b += A * m_isz
        return b

    def step_bytes(bb):
        streamed = 2 * bb * stream_row_bytes()                 # double-buffered DMA blocks
        interm = bb * (A * hid + 3 * A + rnn + hid) * 4        # in-kernel f32 temporaries
        return streamed + interm

    budget = (vmem_limit_bytes * 3) // 4

    if block_b is not None:
        bb = min(B, max(1, int(block_b)))
        if bb < B:
            bb = max(8, _round_up(bb, 8))
    elif B <= 8:
        bb = B                                  # single full-extent block
    else:
        # Grow toward ~2 MiB of streamed bytes per step, stay under the VMEM
        # budget, and keep >= 2 grid steps so v7x megacore uses both cores.
        cap = min(_round_up(B, 8), max(8, _round_up(pl.cdiv(B, 2), 8)))
        target_stream = 2 * 1024 * 1024
        bb = 8
        while (bb + 8 <= cap
               and step_bytes(bb + 8) <= budget
               and bb * stream_row_bytes() < target_stream):
            bb += 8
    grid = (pl.cdiv(B, bb),)

    in_specs = [
        pl.BlockSpec((bb, hid), lambda b: (b, 0)),         # att_h (precomputed, f32)
        pl.BlockSpec((bb, A, hid), lambda b: (b, 0, 0)),   # p_att_feats (native dtype)
        pl.BlockSpec((bb, A, rnn), lambda b: (b, 0, 0)),   # att_feats   (native dtype)
    ]
    inputs = [att_h, p_att_feats, att_feats]
    if use_mask:
        in_specs.append(pl.BlockSpec((bb, A), lambda b: (b, 0)))
        inputs.append(att_mask)
    in_specs.append(pl.BlockSpec((1, hid), lambda b: (0, 0)))   # alpha weight row
    inputs.append(wa_row)

    kernel = functools.partial(_attention_kernel, has_mask=use_mask)

    return pl.pallas_call(
        kernel,
        out_shape=jax.ShapeDtypeStruct((B, rnn), att_feats.dtype),
        grid_spec=pltpu.PrefetchScalarGridSpec(
            num_scalar_prefetch=0,
            grid=grid,
            in_specs=in_specs,
            out_specs=pl.BlockSpec((bb, rnn), lambda b: (b, 0)),
        ),
        compiler_params=pltpu.CompilerParams(
            dimension_semantics=("parallel",),
            vmem_limit_bytes=vmem_limit_bytes),
    )(*inputs)


def attention_reference(h, att_feats, p_att_feats, att_mask=None, *,
                        w_h2att, b_h2att, w_alpha, b_alpha):
    """Pure-JAX reference mirroring the PyTorch forward."""
    att_h = h @ w_h2att + b_h2att.reshape(1, -1)           # (B, hid)
    dot = jnp.tanh(p_att_feats + att_h[:, None, :])        # (B, A, hid)
    score = (dot @ w_alpha)[..., 0] + b_alpha.reshape(1, 1)
    weight = jax.nn.softmax(score, axis=-1)
    if att_mask is not None:
        weight = weight * att_mask.astype(jnp.float32)
        weight = weight / jnp.sum(weight, axis=1, keepdims=True)
    return jnp.einsum("ba,bar->br", weight, att_feats)


if __name__ == "__main__":
    # Small deterministic config (A multiple of 8, rnn = 128 for lane-dense stores).
    B, ATT_SIZE, RNN_SIZE, ATT_HID = 4, 24, 128, 64

    key = jax.random.PRNGKey(0)
    k1, k2, k3, k4, k5, k6, k7, k8 = jax.random.split(key, 8)

    # Synthetic parameters (PyTorch Linear shapes, stored transposed (in, out)).
    w_h2att = jax.random.normal(k1, (RNN_SIZE, ATT_HID), jnp.float32) * 0.1
    b_h2att = jax.random.normal(k2, (ATT_HID,), jnp.float32) * 0.1
    w_alpha = jax.random.normal(k3, (ATT_HID, 1), jnp.float32) * 0.1
    b_alpha = jax.random.normal(k4, (1,), jnp.float32) * 0.1
    params = dict(w_h2att=w_h2att, b_h2att=b_h2att,
                  w_alpha=w_alpha, b_alpha=b_alpha)

    # Example inputs.
    h = jax.random.normal(k5, (B, RNN_SIZE), jnp.float32)
    att_feats = jax.random.normal(k6, (B, ATT_SIZE, RNN_SIZE), jnp.float32)
    p_att_feats = jax.random.normal(k7, (B, ATT_SIZE, ATT_HID), jnp.float32)
    att_mask = (jax.random.uniform(k8, (B, ATT_SIZE)) > 0.3).astype(jnp.float32)

    # No-mask path.
    out_nomask = jax.block_until_ready(
        attention_pallas(h, att_feats, p_att_feats, **params))
    ref_nomask = attention_reference(h, att_feats, p_att_feats, **params)
    assert jnp.allclose(out_nomask, ref_nomask, atol=1e-3, rtol=1e-3), \
        "no-mask mismatch"

    # Masked path.
    out_mask = jax.block_until_ready(
        attention_pallas(h, att_feats, p_att_feats, att_mask, **params))
    ref_mask = attention_reference(h, att_feats, p_att_feats, att_mask, **params)
    assert jnp.allclose(out_mask, ref_mask, atol=1e-3, rtol=1e-3), "mask mismatch"

    print("KERNEL_OK")
</pallas_src>

<mosaic_0001>
module attributes {stable_mosaic.version = 11 : i64} {
  func.func @_attention_kernel(%arg0: i32, %arg1: memref<4x64xf32, #tpu.memory_space<vmem>>, %arg2: memref<4x24x64xf32, #tpu.memory_space<vmem>>, %arg3: memref<4x24x128xf32, #tpu.memory_space<vmem>>, %arg4: memref<1x64xf32, #tpu.memory_space<vmem>>, %arg5: memref<4x128xf32, #tpu.memory_space<vmem>>) attributes {dimension_semantics = [#tpu.dimension_semantics<parallel>], iteration_bounds = array<i64: 1>, scalar_prefetch = 0 : i64, scratch_operands = 0 : i64, tpu.core_type = #tpu.core_type<tc>, window_params = [{transform_indices = @transform_0, window_bounds = array<i64: 4, 64>}, {transform_indices = @transform_1, window_bounds = array<i64: 4, 24, 64>}, {transform_indices = @transform_2, window_bounds = array<i64: 4, 24, 128>}, {pipeline_mode = #tpu.pipeline_mode<synchronous>, transform_indices = @transform_3, window_bounds = array<i64: 1, 64>}, {transform_indices = @transform_4, window_bounds = array<i64: 4, 128>}]} {
    %c0 = arith.constant 0 : index
    %c0_0 = arith.constant 0 : index
    %0 = vector.load %arg1[%c0, %c0_0] : memref<4x64xf32, #tpu.memory_space<vmem>>, vector<4x64xf32>
    %c0_1 = arith.constant 0 : index
    %c0_2 = arith.constant 0 : index
    %c0_3 = arith.constant 0 : index
    %1 = vector.load %arg2[%c0_1, %c0_2, %c0_3] : memref<4x24x64xf32, #tpu.memory_space<vmem>>, vector<4x24x64xf32>
    %2 = vector.shape_cast %0 : vector<4x64xf32> to vector<4x1x64xf32>
    %3 = vector.broadcast %2 : vector<4x1x64xf32> to vector<4x24x64xf32>
    %4 = arith.addf %1, %3 : vector<4x24x64xf32>
    %5 = math.tanh %4 : vector<4x24x64xf32>
    %c0_4 = arith.constant 0 : index
    %c0_5 = arith.constant 0 : index
    %6 = vector.load %arg4[%c0_4, %c0_5] : memref<1x64xf32, #tpu.memory_space<vmem>>, vector<1x64xf32>
    %7 = vector.shape_cast %6 : vector<1x64xf32> to vector<1x1x64xf32>
    %8 = vector.broadcast %7 : vector<1x1x64xf32> to vector<4x24x64xf32>
    %9 = arith.mulf %5, %8 : vector<4x24x64xf32>
    %cst = arith.constant dense<0.000000e+00> : vector<4x24xf32>
    %10 = vector.multi_reduction <add>, %9, %cst [2] : vector<4x24x64xf32> to vector<4x24xf32>
    %cst_6 = arith.constant dense<0xFF800000> : vector<4xf32>
    %11 = vector.multi_reduction <maximumf>, %10, %cst_6 [1] : vector<4x24xf32> to vector<4xf32>
    %12 = vector.shape_cast %11 : vector<4xf32> to vector<4x1xf32>
    %13 = vector.broadcast %12 : vector<4x1xf32> to vector<4x24xf32>
    %14 = arith.subf %10, %13 : vector<4x24xf32>
    %15 = math.exp %14 : vector<4x24xf32>
    %cst_7 = arith.constant dense<0.000000e+00> : vector<4xf32>
    %16 = vector.multi_reduction <add>, %15, %cst_7 [1] : vector<4x24xf32> to vector<4xf32>
    %17 = vector.shape_cast %16 : vector<4xf32> to vector<4x1xf32>
    %cst_8 = arith.constant 1.000000e+00 : f32
    %18 = vector.broadcast %cst_8 : f32 to vector<4x1xf32>
    %19 = arith.divf %18, %17 : vector<4x1xf32>
    %20 = vector.broadcast %19 : vector<4x1xf32> to vector<4x24xf32>
    %21 = arith.mulf %15, %20 : vector<4x24xf32>
    %22 = vector.shape_cast %21 : vector<4x24xf32> to vector<4x1x24xf32>
    %c0_9 = arith.constant 0 : index
    %c0_10 = arith.constant 0 : index
    %c0_11 = arith.constant 0 : index
    %23 = vector.load %arg3[%c0_9, %c0_10, %c0_11] : memref<4x24x128xf32, #tpu.memory_space<vmem>>, vector<4x24x128xf32>
    "tpu.trace_start"() <{level = 10 : i32, message = "bqa,bar->bqr"}> : () -> ()
    %cst_12 = arith.constant dense<0.000000e+00> : vector<4x1x128xf32>
    %24 = tpu.matmul %22, %23, %cst_12 {dimension_numbers = #tpu.dot_dimension_numbers<[2], [1], [1], [2], [0, 0, 0, 1, 1, 2], [0], [0]>} : vector<4x1x24xf32>, vector<4x24x128xf32>, vector<4x1x128xf32> -> vector<4x1x128xf32>
    "tpu.trace_stop"() : () -> ()
    %25 = vector.shape_cast %24 : vector<4x1x128xf32> to vector<4x128xf32>
    %c0_13 = arith.constant 0 : index
    %c0_14 = arith.constant 0 : index
    %26 = vector.load %arg5[%c0_13, %c0_14] : memref<4x128xf32, #tpu.memory_space<vmem>>, vector<4x128xf32>
    tpu.vector_store %arg5[%c0_13, %c0_14], %25 {strides = array<i32>} : memref<4x128xf32, #tpu.memory_space<vmem>>, vector<4x128xf32>,
    return
  }
  func.func @transform_0(%arg0: i32) -> (i32, i32) {
    %c0_i32 = arith.constant 0 : i32
    %c0_i32_0 = arith.constant 0 : i32
    return %arg0, %c0_i32 : i32, i32
  }
  func.func @transform_1(%arg0: i32) -> (i32, i32, i32) {
    %c0_i32 = arith.constant 0 : i32
    %c0_i32_0 = arith.constant 0 : i32
    %c0_i32_1 = arith.constant 0 : i32
    return %arg0, %c0_i32, %c0_i32_0 : i32, i32, i32
  }
  func.func @transform_2(%arg0: i32) -> (i32, i32, i32) {
    %c0_i32 = arith.constant 0 : i32
    %c0_i32_0 = arith.constant 0 : i32
    %c0_i32_1 = arith.constant 0 : i32
    return %arg0, %c0_i32, %c0_i32_0 : i32, i32, i32
  }
  func.func @transform_3(%arg0: i32) -> (i32, i32) {
    %c0_i32 = arith.constant 0 : i32
    %c0_i32_0 = arith.constant 0 : i32
    %c0_i32_1 = arith.constant 0 : i32
    return %c0_i32, %c0_i32_0 : i32, i32
  }
  func.func @transform_4(%arg0: i32) -> (i32, i32) {
    %c0_i32 = arith.constant 0 : i32
    %c0_i32_0 = arith.constant 0 : i32
    return %arg0, %c0_i32 : i32, i32
  }
}

</mosaic_0001>

<bundles_post_ra>
// kernel: tpu_custom_call.1
= control target key start
LH: loop header
LB: loop body
LE: loop exit
PB: predicated region body
PF: predicated region fallthrough
CT: control target
= control target key end

     0   :  { %9 = vsyncpa [#allocation3], 0  ;;  %s1453_s0 = inlined_call_operand.hbm [shape: f32[4,64], index: 0, kind: input, shape index: {}]   ;;  %s1454_s1 = inlined_call_operand.hbm [shape: f32[4,24,64], index: 1, kind: input, shape index: {}]   ;;  %s1455_s2 = inlined_call_operand.hbm [shape: f32[4,24,128], index: 2, kind: input, shape index: {}]   ;;  %s1456_s3 = inlined_call_operand.vmem [shape: f32[1,64], index: 3, kind: input, shape index: {}]   ;;  %s1457_s4 = inlined_call_operand.hbm [shape: f32[4,128], index: 4, kind: output, shape index: {}]  }
   0x1   :  { %10 = vsyncpa [#allocation6], 0 }
   0x2   :  { %11 = vsyncpa [#allocation4], 0  ;;  %s1143_s15 = smov [#allocation5]   ;;  %s1049_s19 = scalar_lea.hbm %s1454_s1, 1536 }
   0x3   :  { %s27_s16 = sshll.u32 %s1143_s15, 4  ;;  %p1050_p0 = scmp.ne.s32.totalorder %s1454_s1, %s1049_s19  ;;  %s28_s16 = int_to_ptr.vmem [resolvable:$true] %s27_s16 }
   0x4   :  { %p1053_p1 = scmp.lt.u32.totalorder %s1049_s19, %s1454_s1 }
   0x6   :  { %p1055_p2 = pnand %p1053_p1, %p1050_p0 }
   0x8   :  { %1058 = shalt.err (!%p1055_p2)
}
   0x9   :  { %s1059_s24 = scalar_lea.vmem %s28_s16, 1536  ;;  %p1064_p4 = scmp.lt.s32.totalorder %s28_s16, %s28_s16 }
   0xa   :  { %p1060_p3 = scmp.ne.s32.totalorder %s28_s16, %s1059_s24  ;;  %p1065_p5 = scmp.lt.s32.totalorder %s1059_s24, %s1059_s24 }
   0xc   :  { %p1066_p6 = por %p1065_p5, %p1064_p4 }
   0xe   :  { %p1067_p7 = pnand %p1066_p6, %p1060_p3 }
  0x10   :  { %1070 = shalt.err (!%p1067_p7)
}
  0x11   :  { %s1144_s25 = smov 128   ;;  %s1145_s26 = smov 8  }
  0x12   :  { %33 = dma.hbm_to_vmem [thread:$0]  %s1454_s1, 1536, %s28_s16, [#allocation6], %s1144_s25, %s1144_s25, %s1145_s26  }
  0x13   :  { %s1146_s29 = smov [#allocation2]   ;;  %s1147_s5 = smov [#allocation7]  }
  0x14   :  { %s18_s30 = sshll.u32 %s1146_s29, 4  ;;  %s39_s6 = sshll.u32 %s1147_s5, 4  ;;  %s19_s30 = int_to_ptr.vmem [resolvable:$true] %s18_s30  ;;  %s40_s6 = int_to_ptr.vmem [resolvable:$true] %s39_s6 }
  0x15   :  { %s1071_s9 = scalar_lea.hbm %s1453_s0, 64 }
  0x16   :  { %p1072_p8 = scmp.ne.s32.totalorder %s1453_s0, %s1071_s9  ;;  %p1075_p9 = scmp.lt.u32.totalorder %s1071_s9, %s1453_s0 }
  0x18   :  { %p1077_p10 = pnand %p1075_p9, %p1072_p8 }
  0x1a   :  { %1080 = shalt.err (!%p1077_p10)
}
  0x1b   :  { %s1081_s1 = scalar_lea.vmem %s19_s30, 64  ;;  %p1086_p12 = scmp.lt.s32.totalorder %s19_s30, %s19_s30 }
  0x1c   :  { %p1082_p11 = scmp.ne.s32.totalorder %s19_s30, %s1081_s1  ;;  %p1087_p13 = scmp.lt.s32.totalorder %s1081_s1, %s1081_s1 }
  0x1e   :  { %p1088_p0 = por %p1087_p13, %p1086_p12 }
  0x20   :  { %p1089_p1 = pnand %p1088_p0, %p1082_p11 }
  0x22   :  { %1092 = shalt.err (!%p1089_p1)
}
  0x23   :  { %21 = dma.hbm_to_vmem [thread:$0]  %s1453_s0, 64, %s19_s30, [#allocation3]  }
  0x24   :  { %s1093_s18 = scalar_lea.hbm %s1455_s2, 1536 }
  0x25   :  { %p1094_p2 = scmp.ne.s32.totalorder %s1455_s2, %s1093_s18  ;;  %p1097_p3 = scmp.lt.u32.totalorder %s1093_s18, %s1455_s2 }
  0x27   :  { %p1099_p4 = pnand %p1097_p3, %p1094_p2 }
  0x29   :  { %1102 = shalt.err (!%p1099_p4)
}
  0x2a   :  { %s1103_s23 = scalar_lea.vmem %s40_s6, 1536  ;;  %p1108_p6 = scmp.lt.s32.totalorder %s40_s6, %s40_s6 }
  0x2b   :  { %p1104_p5 = scmp.ne.s32.totalorder %s40_s6, %s1103_s23  ;;  %p1109_p7 = scmp.lt.s32.totalorder %s1103_s23, %s1103_s23 }
  0x2d   :  { %p1110_p8 = por %p1109_p7, %p1108_p6 }
  0x2f   :  { %p1111_p9 = pnand %p1110_p8, %p1104_p5 }
  0x31   :  { %1114 = shalt.err (!%p1111_p9)
}
  0x32   :  { %45 = dma.hbm_to_vmem [thread:$0]  %s1455_s2, 1536, %s40_s6, [#allocation6], %s1144_s25, %s1144_s25, %s1145_s26  }
  0x33   :  { %1137 = dma.done.wait [#allocation3], 64  }
  0x34   :  { %1138 = vsyncadd [#allocation3], 4294967232 }
  0x35   :  { %1139 = dma.done.wait [#allocation6], 3072  }
  0x36   :  { %1140 = vsyncadd [#allocation6], 4294964224  ;;  %v82_v0 = vlaneseq  ;;  %v1148_v1 = vmov 1966171168   ;;  %v58_v10 = vld [vmem:[#allocation5] sm:$0xff]  ;;  %v59_v11 = vld [vmem:[#allocation5 + $0x8] sm:$0xff] }
  0x37   :  { %v80_v2 = vunpack.c.l.s4 %v1148_v1  ;;  %v916_v7 = vld.sshfl [vmem:[#allocation2] sm:$0x33 pattern:$0x75316420]  ;;  %v60_v14 = vld [vmem:[#allocation5 + $0x10] sm:$0xff]  ;;  %v62_v17 = vld [vmem:[#allocation5 + $0x20] sm:$0xff] }
  0x38   :  { %v1222_v3 = vshrl.u32 %v82_v0, 7  ;;  %v78_v9 = vcombine.high %v916_v7, %v916_v7  ;;  %v61_v16 = vld [vmem:[#allocation5 + $0x18] sm:$0xff]  ;;  %v63_v21 = vld [vmem:[#allocation5 + $0x28] sm:$0xff]  ;;  %v64_v23 = vld [vmem:[#allocation5 + $0x30] sm:$0xff]  ;;  %vm158_vm0 = vcmask 523264   ;;  %vm218_vm1 = vcmask 130112  }
  0x39   :  { %v81_v4 = vunpack.c.0.s8 %v80_v2  ;;  %v65_v29 = vld [vmem:[#allocation5 + $0x38] sm:$0xff]  ;;  %v66_v31 = vld [vmem:[#allocation5 + $0x40] sm:$0xff]  ;;  %v67_v34 = vld [vmem:[#allocation5 + $0x48] sm:$0xff]  ;;  %vm225_vm2 = vcmask 195712   ;;  %vm269_vm3 = vcmask 1041409   ;;  %vm271_vm4 = vcmask 1042434  }
  0x3a   :  { %v1226_v6 = vsub.s32 0, %v1222_v3  ;;  %v68_v36 = vld [vmem:[#allocation5 + $0x50] sm:$0xff]  ;;  %v917_v37 = vld [vmem:[%s1456_s3] ss:$0 sm:$0xff]  ;;  %vm273_vm5 = vcmask 1043459   ;;  %vm276_vm6 = vcmask 191488  }
  0x3b   :  { %v84_v5 = vsub.s32 %v81_v4, %v1222_v3  ;;  %v69_v39 = vld [vmem:[#allocation5 + $0x58] sm:$0xff]  ;;  %vm1151_vm7 = vmmov 0   ;;  %vm521_vm8 = vcmask 195584   ;;  %s1153_s3 = smov [#allocation8]  }
  0x3c   :  { %s906_s26 = sshll.u32 %s1153_s3, 4  ;;  %s907_s26 = int_to_ptr.vmem [resolvable:$true] %s906_s26 }
  0x3d   :  { %v85_v8 = vrot.slane %v916_v7, %v84_v5  ;;  %v92_v13 = vrot.slane %v78_v9, %v84_v5  ;;  %s1115_s27 = scalar_lea.vmem %s907_s26, 64  ;;  %p1120_p11 = scmp.lt.s32.totalorder %s907_s26, %s907_s26 }
  0x3e   :  { %p1116_p10 = scmp.ne.s32.totalorder %s907_s26, %s1115_s27  ;;  %p1121_p12 = scmp.lt.s32.totalorder %s1115_s27, %s1115_s27 }
  0x3f   :  { %v98_v12 = vrot.slane %v85_v8, %v1226_v6  ;;  %v93_v15 = vcombine.high %v85_v8, %v85_v8  ;;  %v102_v19 = vrot.slane %v92_v13, %v1226_v6  ;;  %v94_v27 = vcombine.high %v92_v13, %v92_v13 }
  0x40   :  { %p1122_p13 = por %p1121_p12, %p1120_p11 }
  0x41   :  { %v115_v18 = vadd.f32 %v98_v12, %v58_v10  ;;  %v116_v20 = vadd.f32 %v98_v12, %v59_v11  ;;  %v117_v22 = vadd.f32 %v98_v12, %v60_v14  ;;  %v106_v24 = vrot.slane %v93_v15, %v1226_v6 }
  0x42   :  { %v118_v25 = vadd.f32 %v102_v19, %v61_v16  ;;  %v119_v26 = vadd.f32 %v102_v19, %v62_v17  ;;  %v120_v28 = vadd.f32 %v102_v19, %v63_v21  ;;  %v110_v33 = vrot.slane %v94_v27, %v1226_v6  ;;  %p1123_p0 = pnand %p1122_p13, %p1116_p10 }
  0x43   :  { %999 = vtanh.f32 %v115_v18  ;;  %v121_v30 = vadd.f32 %v106_v24, %v64_v23  ;;  %v122_v32 = vadd.f32 %v106_v24, %v65_v29  ;;  %v123_v35 = vadd.f32 %v106_v24, %v66_v31 }
  0x44   :  { %1001 = vtanh.f32 %v116_v20  ;;  %v124_v38 = vadd.f32 %v110_v33, %v67_v34  ;;  %v125_v41 = vadd.f32 %v110_v33, %v68_v36  ;;  %v126_v46 = vadd.f32 %v110_v33, %v69_v39 }
  0x45   :  { %1003 = vtanh.f32 %v118_v25  ;;  %v208_v20 = vand.u32 127, %v82_v0 }
  0x46   :  { %1005 = vtanh.f32 %v119_v26 }
  0x47   :  { %1007 = vtanh.f32 %v117_v22  ;;  %v213_v23 = vadd.s32 4294967288, %v208_v20  ;;  %v220_v25 = vadd.s32 4294967280, %v208_v20  ;;  %v1259_v27 = vsub.s32 %v208_v20, %v1222_v3 }
  0x48   :  { %1009 = vtanh.f32 %v120_v28 }
  0x49   :  { %1011 = vtanh.f32 %v121_v30  ;;  %v1262_v28 = vsub.s32 %v213_v23, %v1222_v3  ;;  %v1267_v0 = vsub.s32 %v220_v25, %v1222_v3 }
  0x4a   :  { %1013 = vtanh.f32 %v122_v32 }
  0x4b   :  { %1015 = vtanh.f32 %v123_v35 }
  0x4c   :  { %1017 = vtanh.f32 %v124_v38 }
  0x4d   :  { %v1000_v40 = vpop.eup %999  ;;  %1019 = vtanh.f32 %v125_v41 }
  0x4e   :  { %v1002_v42 = vpop.eup %1001  ;;  %v146_v43 = vmul.f32 %v1000_v40, %v917_v37  ;;  %1021 = vtanh.f32 %v126_v46 }
  0x4f   :  { %v1004_v44 = vpop.eup %1003  ;;  %v147_v45 = vmul.f32 %v1002_v42, %v917_v37 }
  0x50   :  { %v1006_v47 = vpop.eup %1005  ;;  %v159_v48 = vsel %vm158_vm0, %v146_v43, 0.0  ;;  %v149_v49 = vmul.f32 %v1004_v44, %v917_v37 }
  0x51   :  { %v1008_v50 = vpop.eup %1007  ;;  %160 = vadd.xlane.f32.xlu0 %v159_v48  ;;  %v150_v51 = vmul.f32 %v1006_v47, %v917_v37  ;;  %v162_v54 = vsel %vm158_vm0, %v147_v45, 0.0 }
  0x52   :  { %v1010_v52 = vpop.eup %1009  ;;  %v168_v53 = vsel %vm158_vm0, %v149_v49, 0.0  ;;  %v148_v55 = vmul.f32 %v1008_v50, %v917_v37 }
  0x53   :  { %v1012_v56 = vpop.eup %1011  ;;  %169 = vadd.xlane.f32.xlu1 %v168_v53  ;;  %v171_v57 = vsel %vm158_vm0, %v150_v51, 0.0  ;;  %v151_v58 = vmul.f32 %v1010_v52, %v917_v37 }
  0x54   :  { %v1014_v59 = vpop.eup %1013  ;;  %v165_v60 = vsel %vm158_vm0, %v148_v55, 0.0  ;;  %v152_v61 = vmul.f32 %v1012_v56, %v917_v37 }
  0x55   :  { %163 = vadd.xlane.f32.xlu0 %v162_v54  ;;  %v1016_v62 = vpop.eup %1015  ;;  %v174_v63 = vsel %vm158_vm0, %v151_v58, 0.0  ;;  %v153_v1 = vmul.f32 %v1014_v59, %v917_v37  ;;  %v1149_v58 = vmov 0   ;;  %v287_v59 = vsub.s32 1, %v1222_v3 }
  0x56   :  { %v1018_v2 = vpop.eup %1017  ;;  %v177_v4 = vsel %vm158_vm0, %v152_v61, 0.0  ;;  %v154_v5 = vmul.f32 %v1016_v62, %v917_v37  ;;  %998 = vset.pattern.permute.xlu0 %v1149_v58  ;;  %997 = vset.pattern.permute.xlu1 %v1149_v58 }
  0x57   :  { %172 = vadd.xlane.f32.xlu1 %v171_v57  ;;  %v1020_v7 = vpop.eup %1019  ;;  %v180_v8 = vsel %vm158_vm0, %v153_v1, 0.0  ;;  %v155_v9 = vmul.f32 %v1018_v2, %v917_v37 }
  0x58   :  { %v1022_v10 = vpop.eup %1021  ;;  %v183_v11 = vsel %vm158_vm0, %v154_v5, 0.0  ;;  %v156_v12 = vmul.f32 %v1020_v7, %v917_v37 }
  0x59   :  { %166 = vadd.xlane.f32.xlu0 %v165_v60  ;;  %v186_v13 = vsel %vm158_vm0, %v155_v9, 0.0  ;;  %v157_v14 = vmul.f32 %v1022_v10, %v917_v37 }
  0x5a   :  { %v189_v15 = vsel %vm158_vm0, %v156_v12, 0.0  ;;  %v291_v12 = vsub.s32 2, %v1222_v3 }
  0x5b   :  { %175 = vadd.xlane.f32.xlu1 %v174_v63  ;;  %v192_v16 = vsel %vm158_vm0, %v157_v14, 0.0  ;;  %v295_v63 = vsub.s32 3, %v1222_v3 }
  0x5d   :  { %178 = vadd.xlane.f32.xlu0 %v177_v4 }
  0x5f   :  { %181 = vadd.xlane.f32.xlu1 %v180_v8 }
  0x61   :  { %184 = vadd.xlane.f32.xlu0 %v183_v11 }
  0x63   :  { %187 = vadd.xlane.f32.xlu1 %v186_v13 }
  0x65   :  { %190 = vadd.xlane.f32.xlu0 %v189_v15 }
  0x67   :  { %193 = vadd.xlane.f32.xlu1 %v192_v16 }
  0xde   :  { %v161_v17 = vpop.xlane.xlu0 %160 }
  0xdf   :  { %v212_v41 = vrot.slane %v161_v17, %v1259_v27 }
  0xe0   :  { %v1247_v18 = vpop.xlane.xlu1 %169 }
  0xe1   :  { %v230_v35 = vrot.slane %v1247_v18, %v1259_v27 }
  0xe2   :  { %v164_v19 = vpop.xlane.xlu0 %163 }
  0xe3   :  { %v217_v36 = vrot.slane %v164_v19, %v1262_v28 }
  0xe4   :  { %v1250_v21 = vpop.xlane.xlu1 %172 }
  0xe5   :  { %v234_v32 = vrot.slane %v1250_v21, %v1262_v28  ;;  %v219_v47 = vsel %vm218_vm1, %v217_v36, %v212_v41 }
  0xe6   :  { %v1252_v22 = vpop.xlane.xlu0 %166 }
  0xe7   :  { %v224_v39 = vrot.slane %v1252_v22, %v1267_v0  ;;  %v235_v42 = vsel %vm218_vm1, %v234_v32, %v230_v35 }
  0xe8   :  { %v1254_v24 = vpop.xlane.xlu1 %175 }
  0xe9   :  { %v239_v34 = vrot.slane %v1254_v24, %v1267_v0  ;;  %v226_v50 = vsel %vm225_vm2, %v224_v39, %v219_v47 }
  0xea   :  { %v1256_v26 = vpop.xlane.xlu0 %178 }
  0xeb   :  { %v244_v30 = vrot.slane %v1256_v26, %v1259_v27  ;;  %v240_v44 = vsel %vm225_vm2, %v239_v34, %v235_v42 }
  0xec   :  { %v1264_v29 = vpop.xlane.xlu1 %181  ;;  %v270_v53 = vsel %vm269_vm3, %v240_v44, %v226_v50 }
  0xed   :  { %v248_v31 = vrot.slane %v1264_v29, %v1262_v28 }
  0xee   :  { %v1275_v33 = vpop.xlane.xlu0 %184 }
  0xef   :  { %v253_v37 = vrot.slane %v1275_v33, %v1267_v0  ;;  %v249_v40 = vsel %vm218_vm1, %v248_v31, %v244_v30 }
  0xf0   :  { %v1284_v38 = vpop.xlane.xlu1 %187 }
  0xf1   :  { %v258_v45 = vrot.slane %v1284_v38, %v1259_v27  ;;  %v254_v49 = vsel %vm225_vm2, %v253_v37, %v249_v40 }
  0xf2   :  { %v191_v43 = vpop.xlane.xlu0 %190  ;;  %v272_v55 = vsel %vm271_vm4, %v254_v49, %v270_v53 }
  0xf3   :  { %v262_v46 = vrot.slane %v191_v43, %v1262_v28 }
  0xf4   :  { %v1296_v48 = vpop.xlane.xlu1 %193 }
  0xf5   :  { %v267_v51 = vrot.slane %v1296_v48, %v1267_v0  ;;  %v263_v52 = vsel %vm218_vm1, %v262_v46, %v258_v45 }
  0xf7   :  { %v268_v54 = vsel %vm225_vm2, %v267_v51, %v263_v52 }
  0xf8   :  { %v274_v56 = vsel %vm273_vm5, %v268_v54, %v272_v55 }
  0xf9   :  { %v277_v57 = vsel %vm276_vm6, %v274_v56, -inf }
  0xfa   :  { %278 = vmax.xlane.f32.xlu0 %v277_v57 }
 0x187   :  { %v279_v60 = vpop.xlane.xlu0 %278 }
 0x188   :  { %v284_v61 = vrot.slane %v279_v60, %v1226_v6  ;;  %v288_v62 = vrot.slane %v279_v60, %v287_v59  ;;  %v296_v5 = vrot.slane %v279_v60, %v295_v63  ;;  %v292_v16 = vrot.slane %v279_v60, %v291_v12 }
 0x18a   :  { %v301_v1 = vsub.f32 %v161_v17, %v284_v61  ;;  %v302_v2 = vsub.f32 %v164_v19, %v284_v61  ;;  %v304_v4 = vsub.f32 %v1247_v18, %v288_v62  ;;  %v305_v9 = vsub.f32 %v1250_v21, %v288_v62 }
 0x18b   :  { %v311_v11 = vsub.f32 %v191_v43, %v296_v5  ;;  %v303_v13 = vsub.f32 %v1252_v22, %v284_v61  ;;  %v306_v17 = vsub.f32 %v1254_v24, %v288_v62  ;;  %v307_v21 = vsub.f32 %v1256_v26, %v292_v16 }
 0x18c   :  { %v313_v7 = vmul.f32 1.442695, %v301_v1  ;;  %v315_v8 = vmul.f32 1.442695, %v302_v2  ;;  %v319_v10 = vmul.f32 1.442695, %v304_v4  ;;  %v308_v24 = vsub.f32 %v1264_v29, %v292_v16 }
 0x18d   :  { %v321_v14 = vmul.f32 1.442695, %v305_v9  ;;  %v333_v15 = vmul.f32 1.442695, %v311_v11  ;;  %v317_v18 = vmul.f32 1.442695, %v303_v13  ;;  %v309_v26 = vsub.f32 %v1275_v33, %v292_v16 }
 0x18e   :  { %1023 = vpow2.f32 %v313_v7  ;;  %v323_v22 = vmul.f32 1.442695, %v306_v17  ;;  %v325_v25 = vmul.f32 1.442695, %v307_v21  ;;  %v327_v32 = vmul.f32 1.442695, %v308_v24 }
 0x18f   :  { %1025 = vpow2.f32 %v315_v8  ;;  %v310_v29 = vsub.f32 %v1284_v38, %v296_v5  ;;  %v329_v35 = vmul.f32 1.442695, %v309_v26  ;;  %v312_v37 = vsub.f32 %v1296_v48, %v296_v5 }
 0x190   :  { %1027 = vpow2.f32 %v319_v10 }
 0x191   :  { %1029 = vpow2.f32 %v321_v14  ;;  %v331_v33 = vmul.f32 1.442695, %v310_v29  ;;  %v335_v40 = vmul.f32 1.442695, %v312_v37 }
 0x192   :  { %1031 = vpow2.f32 %v333_v15 }
 0x193   :  { %1033 = vpow2.f32 %v317_v18 }
 0x194   :  { %1035 = vpow2.f32 %v323_v22 }
 0x195   :  { %1037 = vpow2.f32 %v325_v25 }
 0x196   :  { %1039 = vpow2.f32 %v327_v32 }
 0x197   :  { %1041 = vpow2.f32 %v329_v35 }
 0x198   :  { %v1322_v19 = vpop.eup %1023  ;;  %1043 = vpow2.f32 %v331_v33 }
 0x199   :  { %v1324_v20 = vpop.eup %1025  ;;  %350 = vperm.xlu1 %997, %v1322_v19   ;;  %1045 = vpow2.f32 %v335_v40 }
 0x19a   :  { %353 = vperm.xlu0 %998, %v1324_v20   ;;  %v1329_v23 = vpop.eup %1027 }
 0x19b   :  { %v1333_v30 = vpop.eup %1029 }
 0x19c   :  { %v1336_v31 = vpop.eup %1031 }
 0x19d   :  { %359 = vperm.xlu1 %997, %v1329_v23   ;;  %v1340_v34 = vpop.eup %1033 }
 0x19e   :  { %380 = vperm.xlu0 %998, %v1336_v31   ;;  %v1344_v36 = vpop.eup %1035 }
 0x19f   :  { %v1348_v39 = vpop.eup %1037 }
 0x1a0   :  { %v1351_v41 = vpop.eup %1039 }
 0x1a1   :  { %362 = vperm.xlu1 %997, %v1333_v30   ;;  %v1042_v38 = vpop.eup %1041 }
 0x1a2   :  { %v1354_v42 = vpop.eup %1043 }
 0x1a3   :  { %v1357_v43 = vpop.eup %1045 }
 0x1a5   :  { %356 = vperm.xlu1 %997, %v1340_v34  }
 0x1a9   :  { %365 = vperm.xlu1 %997, %v1344_v36  }
 0x1ad   :  { %368 = vperm.xlu1 %997, %v1348_v39  }
 0x1b1   :  { %371 = vperm.xlu1 %997, %v1351_v41  }
 0x1b5   :  { %374 = vperm.xlu1 %997, %v1042_v38  }
 0x1b9   :  { %377 = vperm.xlu1 %997, %v1354_v42  }
 0x1bd   :  { %383 = vperm.xlu1 %997, %v1357_v43  }
 0x218   :  { %v351_v44 = vpop.permute.xlu1 %350 }
 0x219   :  { %v354_v51 = vpop.permute.xlu0 %353  ;;  %v388_v57 = vrot.slane %v351_v44, %v1259_v27 }
 0x21a   :  { %v392_v56 = vrot.slane %v354_v51, %v1262_v28 }
 0x21c   :  { %v360_v45 = vpop.permute.xlu1 %359  ;;  %v393_v9 = vsel %vm218_vm1, %v392_v56, %v388_v57  ;;  %v489_v56 = vld [vmem:[#allocation7 + $0x30] sm:$0xff] }
 0x21d   :  { %v402_v58 = vrot.slane %v360_v45, %v1259_v27  ;;  %v381_v62 = vpop.permute.xlu0 %380  ;;  %v483_v45 = vld [vmem:[#allocation7] sm:$0xff] }
 0x21e   :  { %v434_v10 = vrot.slane %v381_v62, %v1262_v28 }
 0x220   :  { %v363_v46 = vpop.permute.xlu1 %362 }
 0x221   :  { %v406_v53 = vrot.slane %v363_v46, %v1262_v28  ;;  %v484_v46 = vld [vmem:[#allocation7 + $0x8] sm:$0xff] }
 0x223   :  { %v407_v4 = vsel %vm218_vm1, %v406_v53, %v402_v58 }
 0x224   :  { %v357_v47 = vpop.permute.xlu1 %356 }
 0x225   :  { %v397_v1 = vrot.slane %v357_v47, %v1267_v0  ;;  %v1150_v47 = vmov 0.0|0.0  }
 0x226   :  { %974 = vmatprep.subr.bf16.mxu0 %v1150_v47  ;;  %977 = vmatprep.subr.bf16.mxu1 %v1150_v47 }
 0x227   :  { %v398_v14 = vsel %vm225_vm2, %v397_v1, %v393_v9  ;;  %v492_v1 = vld [vmem:[#allocation7 + $0x48] sm:$0xff] }
 0x228   :  { %v366_v48 = vpop.permute.xlu1 %365 }
 0x229   :  { %v411_v54 = vrot.slane %v366_v48, %v1267_v0  ;;  %v487_v48 = vld [vmem:[#allocation7 + $0x20] sm:$0xff] }
 0x22b   :  { %v412_v7 = vsel %vm225_vm2, %v411_v54, %v407_v4 }
 0x22c   :  { %v369_v49 = vpop.permute.xlu1 %368  ;;  %v441_v17 = vsel %vm269_vm3, %v412_v7, %v398_v14 }
 0x22d   :  { %v416_v2 = vrot.slane %v369_v49, %v1259_v27 }
 0x230   :  { %v372_v50 = vpop.permute.xlu1 %371 }
 0x231   :  { %v420_v55 = vrot.slane %v372_v50, %v1262_v28  ;;  %v488_v50 = vld [vmem:[#allocation7 + $0x28] sm:$0xff] }
 0x233   :  { %v421_v8 = vsel %vm218_vm1, %v420_v55, %v416_v2  ;;  %v493_v2 = vld [vmem:[#allocation7 + $0x50] sm:$0xff] }
 0x234   :  { %v375_v52 = vpop.permute.xlu1 %374 }
 0x235   :  { %v425_v60 = vrot.slane %v375_v52, %v1267_v0 }
 0x237   :  { %v426_v11 = vsel %vm225_vm2, %v425_v60, %v421_v8  ;;  %v491_v60 = vld [vmem:[#allocation7 + $0x40] sm:$0xff]  ;;  %v984_v8 = vpack.c.bf16 %v493_v2, %v492_v1 }
 0x238   :  { %v378_v61 = vpop.permute.xlu1 %377  ;;  %v442_v21 = vsel %vm271_vm4, %v426_v11, %v441_v17 }
 0x239   :  { %v430_v5 = vrot.slane %v378_v61, %v1259_v27 }
 0x23b   :  { %v435_v16 = vsel %vm218_vm1, %v434_v10, %v430_v5 }
 0x23c   :  { %v384_v13 = vpop.permute.xlu1 %383 }
 0x23d   :  { %v439_v15 = vrot.slane %v384_v13, %v1267_v0  ;;  %v494_v13 = vld [vmem:[#allocation7 + $0x58] sm:$0xff] }
 0x23f   :  { %v440_v18 = vsel %vm225_vm2, %v439_v15, %v435_v16 }
 0x240   :  { %v443_v22 = vsel %vm273_vm5, %v440_v18, %v442_v21 }
 0x241   :  { %v445_v24 = vsel %vm276_vm6, %v443_v22, 0.0 }
 0x242   :  { %446 = vadd.xlane.f32.xlu0 %v445_v24 }
 0x2cf   :  { %v447_v25 = vpop.xlane.xlu0 %446 }
 0x2d0   :  { %1047 = vrcp.f32 %v447_v25 }
 0x2da   :  { %v1048_v26 = vpop.eup %1047 }
 0x2db   :  { %v462_v32 = vrot.slane %v1048_v26, %v291_v12  ;;  %v454_v29 = vrot.slane %v1048_v26, %v1226_v6  ;;  %v458_v44 = vrot.slane %v1048_v26, %v287_v59  ;;  %v975_v12 = vpack.c.bf16 %v484_v46, %v483_v45 }
 0x2dc   :  { %v1152_v6 = vmov 0.0  }
 0x2dd   :  { %v479_v35 = vmul.f32 %v1042_v38, %v462_v32  ;;  %v471_v37 = vmul.f32 %v1322_v19, %v454_v29  ;;  %v472_v33 = vmul.f32 %v1324_v20, %v454_v29  ;;  %v473_v40 = vmul.f32 %v1340_v34, %v454_v29  ;;  %976 = vmatpush3.bf16.msra.mxu0 %v975_v12  ;;  %v485_v20 = vld [vmem:[#allocation7 + $0x10] sm:$0xff]  ;;  %v486_v38 = vld [vmem:[#allocation7 + $0x18] sm:$0xff] }
 0x2de   :  { %944 = vmatprep.mubr.msk.f32.mxu0 %vm1151_vm7, %v1152_v6  ;;  %v474_v19 = vmul.f32 %v1329_v23, %v458_v44  ;;  %942 = vmatprep.subr.mxu0 %v1152_v6  ;;  %v475_v59 = vmul.f32 %v1333_v30, %v458_v44  ;;  %v476_v34 = vmul.f32 %v1344_v36, %v458_v44 }
 0x2df   :  { %702 = vperm.xlu0 %998, %v479_v35   ;;  %499 = vperm.xlu1 %997, %v471_v37   ;;  %v978_v49 = vpack.c.bf16 %v487_v48, %v486_v38  ;;  %v477_v23 = vmul.f32 %v1348_v39, %v462_v32  ;;  %v478_v51 = vmul.f32 %v1351_v41, %v462_v32  ;;  %v490_v41 = vld [vmem:[#allocation7 + $0x38] sm:$0xff] }
 0x2e0   :  { %953 = vmatprep.mubr.msk.f32.mxu1 %vm1151_vm7, %v1152_v6  ;;  %v466_v30 = vrot.slane %v1048_v26, %v295_v63 }
 0x2e1   :  { %943 = vmatpush3.msra.mxu0 %v485_v20  ;;  %979 = vmatpush3.bf16.msra.mxu1 %v978_v49 }
 0x2e2   :  { %980 = vmatprep.subr.bf16.mxu0 %v1150_v47  ;;  %951 = vmatprep.subr.mxu1 %v1152_v6  ;;  %v480_v36 = vmul.f32 %v1354_v42, %v466_v30  ;;  %v481_v52 = vmul.f32 %v1336_v31, %v466_v30  ;;  %v482_v39 = vmul.f32 %v1357_v43, %v466_v30 }
 0x2e3   :  { %502 = vperm.xlu1 %997, %v472_v33   ;;  %v981_v42 = vpack.c.bf16 %v490_v41, %v489_v56 }
 0x2e5   :  { %952 = vmatpush3.msra.mxu1 %v488_v50 }
 0x2e6   :  { %983 = vmatprep.subr.bf16.mxu1 %v1150_v47 }
 0x2e7   :  { %505 = vperm.xlu1 %997, %v473_v40  }
 0x2eb   :  { %598 = vperm.xlu1 %997, %v474_v19  }
 0x2ef   :  { %601 = vperm.xlu1 %997, %v475_v59  }
 0x2f3   :  { %604 = vperm.xlu1 %997, %v476_v34  }
 0x2f7   :  { %696 = vperm.xlu1 %997, %v477_v23  }
 0x2fb   :  { %699 = vperm.xlu1 %997, %v478_v51  }
 0x2ff   :  { %794 = vperm.xlu1 %997, %v480_v36  }
 0x303   :  { %797 = vperm.xlu1 %997, %v481_v52  }
 0x307   :  { %800 = vperm.xlu1 %997, %v482_v39  }
 0x35e   :  { %v500_v53 = vpop.permute.xlu1 %499  ;;  %v703_v14 = vpop.permute.xlu0 %702 }
 0x35f   :  { %v510_v3 = vrot.slane %v500_v53, %v1259_v27  ;;  %v716_v18 = vrot.slane %v703_v14, %v1267_v0 }
 0x362   :  { %v503_v54 = vpop.permute.xlu1 %502 }
 0x363   :  { %v514_v55 = vrot.slane %v503_v54, %v1262_v28 }
 0x365   :  { %v515_v58 = vsel %vm218_vm1, %v514_v55, %v510_v3 }
 0x366   :  { %v506_v63 = vpop.permute.xlu1 %505 }
 0x367   :  { %v519_v57 = vrot.slane %v506_v63, %v1267_v0 }
 0x369   :  { %v520_v31 = vsel %vm225_vm2, %v519_v57, %v515_v58 }
 0x36a   :  { %945 = vmatmul.mubr.msk.f32.vlgmr.msra.gmra.mrb[0].mxu0 %vm521_vm8, %v520_v31  ;;  %v599_v43 = vpop.permute.xlu1 %598 }
 0x36b   :  { %982 = vmatpush3.bf16.msra.mxu0 %v981_v42  ;;  %962 = vmatprep.mubr.msk.f32.mxu0 %vm1151_vm7, %v1152_v6  ;;  %v609_v4 = vrot.slane %v599_v43, %v1259_v27 }
 0x36c   :  { %960 = vmatprep.subr.mxu0 %v1152_v6 }
 0x36e   :  { %v602_v61 = vpop.permute.xlu1 %601 }
 0x36f   :  { %961 = vmatpush3.msra.mxu0 %v491_v60  ;;  %v613_v62 = vrot.slane %v602_v61, %v1262_v28 }
 0x371   :  { %v614_v9 = vsel %vm218_vm1, %v613_v62, %v609_v4 }
 0x372   :  { %v605_v5 = vpop.permute.xlu1 %604 }
 0x373   :  { %v618_v7 = vrot.slane %v605_v5, %v1267_v0 }
 0x375   :  { %v619_v10 = vsel %vm225_vm2, %v618_v7, %v614_v9 }
 0x376   :  { %954 = vmatmul.mubr.msk.f32.vlgmr.msra.gmra.mrb[0].mxu1 %vm521_vm8, %v619_v10  ;;  %v697_v11 = vpop.permute.xlu1 %696 }
 0x377   :  { %985 = vmatpush3.bf16.msra.mxu1 %v984_v8  ;;  %971 = vmatprep.mubr.msk.f32.mxu1 %vm1151_vm7, %v1152_v6  ;;  %v707_v16 = vrot.slane %v697_v11, %v1259_v27 }
 0x378   :  { %969 = vmatprep.subr.mxu1 %v1152_v6 }
 0x37a   :  { %v700_v15 = vpop.permute.xlu1 %699 }
 0x37b   :  { %v711_v17 = vrot.slane %v700_v15, %v1262_v28  ;;  %970 = vmatpush3.msra.mxu1 %v494_v13 }
 0x37d   :  { %v712_v21 = vsel %vm218_vm1, %v711_v17, %v707_v16 }
 0x37e   :  { %v795_v22 = vpop.permute.xlu1 %794  ;;  %v717_v24 = vsel %vm225_vm2, %v716_v18, %v712_v21 }
 0x37f   :  { %963 = vmatmul.mubr.msk.f32.vlgmr.msra.gmra.mrb[2].mxu0 %vm521_vm8, %v717_v24  ;;  %v805_v32 = vrot.slane %v795_v22, %v1259_v27 }
 0x382   :  { %v798_v25 = vpop.permute.xlu1 %797 }
 0x383   :  { %v809_v26 = vrot.slane %v798_v25, %v1262_v28 }
 0x385   :  { %v810_v37 = vsel %vm218_vm1, %v809_v26, %v805_v32 }
 0x386   :  { %v801_v29 = vpop.permute.xlu1 %800 }
 0x387   :  { %v814_v35 = vrot.slane %v801_v29, %v1267_v0 }
 0x389   :  { %v815_v33 = vsel %vm225_vm2, %v814_v35, %v810_v37 }
 0x38a   :  { %972 = vmatmul.mubr.msk.f32.vlgmr.msra.gmra.mrb[2].mxu1 %vm521_vm8, %v815_v33 }
 0x43d   :  { %v590_v40 = vpop.f32.mrb[0].mxu0 }
 0x43e   :  { %v946_v44 = vpop.f32.mrb[1].mxu0 }
 0x449   :  { %v688_v45 = vpop.f32.mrb[0].mxu1 }
 0x44a   :  { %v892_v46 = vrot.slane %v688_v45, 7  ;;  %v955_v47 = vpop.f32.mrb[1].mxu1 }
 0x44c   :  { %v893_v12 = vsel %vm269_vm3, %v892_v46, %v590_v40 }
 0x452   :  { %v786_v6 = vpop.f32.mrb[2].mxu0 }
 0x453   :  { %v894_v28 = vrot.slane %v786_v6, 6  ;;  %v964_v19 = vpop.f32.mrb[3].mxu0 }
 0x455   :  { %v895_v27 = vsel %vm271_vm4, %v894_v28, %v893_v12 }
 0x45d   :  { %v884_v0 = vpop.f32.mrb[2].mxu1 }
 0x45e   :  { %v896_v20 = vrot.slane %v884_v0, 5  ;;  %v973_v59 = vpop.f32.mrb[3].mxu1 }
 0x460   :  { %v897_v34 = vsel %vm273_vm5, %v896_v20, %v895_v27 }
 0x461   :  { %899 = vst [vmem:[#allocation8] sm:$0xf] %v897_v34 }
 0x462   :  { %1126 = shalt.err (!%p1123_p0)
}
 0x463   :  { %s1127_s30 = scalar_lea.hbm %s1457_s4, 64 }
 0x464   :  { %p1128_p1 = scmp.ne.s32.totalorder %s1457_s4, %s1127_s30  ;;  %p1131_p2 = scmp.lt.u32.totalorder %s1127_s30, %s1457_s4 }
 0x466   :  { %p1133_p3 = pnand %p1131_p2, %p1128_p1 }
 0x468   :  { %1136 = shalt.err (!%p1133_p3)
}
 0x469   :  { %909 = dma.vmem_to_hbm [thread:$0]  %s907_s26, 64, %s1457_s4, [#allocation4]  }
 0x46a   :  { %1141 = dma.done.wait [#allocation4], 64  }
 0x46b   :  { %1142 = vsyncadd [#allocation4], 4294967232 }
 0x46c   :  { %913 = vsyncpa [#allocation3], 1 }
 0x46d   :  { %914 = vsyncpa [#allocation6], 1 }
 0x46e   :  { %915 = vsyncpa [#allocation4], 1 }

</bundles_post_ra>
